<compile_context>
chip_gen: v7x
topology: tpu7x:2x2x1
jax: 0.10.0
libtpu: 0.0.40
codegen_flags: <defaults>
</compile_context>

<pallas_src>
import functools

import jax
import jax.numpy as jnp
from jax.experimental import pallas as pl
from jax.experimental.pallas import tpu as pltpu

# bgr2gray coefficients (channel order B, G, R); inverse_transform(x) = (x + 1) / 2
_GRAY_W = (0.114, 0.587, 0.299)


# ----------------------------------------------------------------------------
# Single fused kernel: motion summary + generator (both streams) + combination
# ----------------------------------------------------------------------------
def _bi_twa_kernel(T, K, Fn, C, HW, want_streams,
                   wp_ref,              # SMEM: packed [Wx (C*C), Wm (C), b (C)]
                   p_first_ref,         # (Bt, 1, C, HW)  preceding frame 0
                   p_last_ref,          # (Bt, 1, C, HW)  preceding frame K-1  (= xt)
                   f_first_ref,         # (Bt, 1, C, HW)  following frame 0    (= xt_F)
                   f_last_ref,          # (Bt, 1, C, HW)  following frame Fn-1
                   *out_refs):          # (Bt, T, C*HW) each (fwd, bwd, comb) or (comb,)
    if want_streams:
        fwd_ref, bwd_ref, comb_ref = out_refs
    else:
        (comb_ref,) = out_refs

    def gray(x):                        # x: (Bt, C, HW) in [-1, 1]
        inv = (x + 1.0) * 0.5           # inverse_transform
        if C == 1:                      # torch path skips bgr2gray for 1 channel
            return inv[:, 0, :]
        return (_GRAY_W[0] * inv[:, 0, :]
                + _GRAY_W[1] * inv[:, 1, :]
                + _GRAY_W[2] * inv[:, 2, :])                      # (Bt, HW)

    x_fwd = p_last_ref[:, 0]            # (Bt, C, HW)  last preceding frame
    x_bwd = f_first_ref[:, 0]           # (Bt, C, HW)  first following frame

    # Telescoping identity: mean_t(g[t+1]-g[t]) == (g[last]-g[first])/(N-1).
    # The backward stream's temporal reversal only negates every diff, so it folds
    # into the subtraction order (no explicit reversal needed).
    m_f = (gray(x_fwd) - gray(p_first_ref[:, 0])) * (1.0 / float(K - 1))    # (Bt, HW)
    m_b = (gray(x_bwd) - gray(f_last_ref[:, 0])) * (1.0 / float(Fn - 1))    # (Bt, HW)

    # Time scales: forward frame t uses (t+1); the backward stream is stored already
    # time-reversed, so slot t uses (T - t).  Backward weight w[t] = (t+1)/(T+1).
    tidx = jax.lax.broadcasted_iota(jnp.int32, (1, T, 1), 1).astype(jnp.float32)
    scale_f = tidx + 1.0                          # (1, T, 1)
    scale_b = float(T) - tidx                     # (1, T, 1)
    w_b = scale_f * (1.0 / float(T + 1))          # (1, T, 1)

    nwx = C * C
    for c in range(C):                  # static unroll (C is 1 or 3)
        # 1x1 conv over channels as scalar-weighted VPU FMAs (weights from SMEM).
        bc = wp_ref[nwx + C + c]
        cont_f = x_fwd[:, 0, :] * wp_ref[0 * C + c]
        cont_b = x_bwd[:, 0, :] * wp_ref[0 * C + c]
        for k in range(1, C):
            wkc = wp_ref[k * C + c]
            cont_f = cont_f + x_fwd[:, k, :] * wkc
            cont_b = cont_b + x_bwd[:, k, :] * wkc
        cont_f = cont_f + bc                                    # (Bt, HW)
        cont_b = cont_b + bc
        wmc = wp_ref[nwx + c]
        mot_f = m_f * wmc                                       # (Bt, HW)
        mot_b = m_b * wmc

        # All T frames of this channel at once: (Bt, T, HW), lane-dense.
        fwd_c = jnp.tanh(cont_f[:, None, :] + scale_f * mot_f[:, None, :])
        bwd_c = jnp.tanh(cont_b[:, None, :] + scale_b * mot_b[:, None, :])
        comb_c = fwd_c + w_b * (bwd_c - fwd_c)    # == (1-w)*fwd + w*bwd

        lo, hi = c * HW, (c + 1) * HW             # 128-aligned static lane slice
        if want_streams:
            fwd_ref[:, :, lo:hi] = fwd_c
            bwd_ref[:, :, lo:hi] = bwd_c
        comb_ref[:, :, lo:hi] = comb_c


# ----------------------------------------------------------------------------
# Wrapper (mirrors BidirectionalTimeWeightedAverageFillInModel.forward)
# ----------------------------------------------------------------------------
def init_params(gf_dim, c_dim, feature_size):
    # conv_lstm_state_size = 8 * gf_dim (unused by the stand-in generator)
    del gf_dim, feature_size
    C = c_dim
    Wx = 0.8 * jnp.eye(C, dtype=jnp.float32) + \
        0.05 * (jnp.arange(C * C, dtype=jnp.float32).reshape(C, C) / float(C * C))
    Wm = 0.1 + 0.02 * jnp.arange(C, dtype=jnp.float32)    # (C,)
    b = 0.01 * jnp.arange(C, dtype=jnp.float32)           # (C,)
    return {"Wx": Wx, "Wm": Wm, "b": b}


def _pick_batch_tile(B, T, C, HW, n_out, vmem_budget_bytes=8 << 20):
    """Largest divisor of B that keeps >=2 grid steps (v7x has 2 TensorCores) and keeps
    the double-buffered per-step working set under a conservative VMEM budget."""
    per_sample = 2 * 4 * (4 * C * HW + n_out * T * C * HW)   # f32, in+out, 2x buffered
    best = 1
    for bt in range(1, B + 1):
        if B % bt:
            continue
        if B >= 2 and B // bt < 2:
            continue
        if bt * per_sample > vmem_budget_bytes:
            continue
        best = bt
    return best


def bi_twa_forward(T, preceding_frames, following_frames, params, want_streams=True):
    B, K, C, H, W = preceding_frames.shape
    Fn = following_frames.shape[1]
    assert K >= 2 and Fn >= 2, "need >=2 preceding and >=2 following frames (diff/mean)"
    assert C in (1, 3), "kernel supports 1-channel or 3-channel (BGR) frames"
    HW = H * W
    assert HW % 128 == 0, "H*W must be a multiple of 128 for 128-aligned lane slices"
    # TODO(synk): MCNet (conv-LSTM encoder/decoder) source was not provided; the
    # generator is a deterministic 1x1-conv + tanh stand-in with the same I/O contract.
    # TODO(synk): for very large frames/T (e.g. 240x320, T>=10) add a C*HW lane-chunk
    # or T grid axis so the per-step (Bt, T, C*HW) outputs fit v7x's 64 MiB VMEM.

    CHW = C * HW
    prec = preceding_frames.astype(jnp.float32).reshape(B, K, C, HW)   # free reshape
    foll = following_frames.astype(jnp.float32).reshape(B, Fn, C, HW)  # free reshape

    # Packed 1-D generator weights -> single small SMEM vector (no 2-D SMEM padding).
    wpack = jnp.concatenate([params["Wx"].reshape(-1),
                             params["Wm"].reshape(-1),
                             params["b"].reshape(-1)]).astype(jnp.float32)

    n_out = 3 if want_streams else 1
    Bt = _pick_batch_tile(B, T, C, HW, n_out)
    nb = B // Bt

    def frame_spec(frame_idx):
        # Block over (batch tile, single frame, all channels, all pixels); the frame
        # index lives on a leading dim so only that one frame is DMA'd per stream end.
        return pl.BlockSpec((Bt, 1, C, HW), lambda b: (b, frame_idx, 0, 0))

    out_spec = pl.BlockSpec((Bt, T, CHW), lambda b: (b, 0, 0))     # lane-dense stores
    out_sds = jax.ShapeDtypeStruct((B, T, CHW), jnp.float32)
    smem_spec = pl.BlockSpec(memory_space=pltpu.MemorySpace.SMEM)

    outs = pl.pallas_call(
        functools.partial(_bi_twa_kernel, T, K, Fn, C, HW, want_streams),
        out_shape=tuple([out_sds] * n_out),
        grid=(nb,),
        in_specs=[
            smem_spec,                 # packed weights (C*C + 2C,)
            frame_spec(0),             # preceding frame 0
            frame_spec(K - 1),         # preceding frame K-1 (= xt)
            frame_spec(0),             # following frame 0   (= xt_F)
            frame_spec(Fn - 1),        # following frame Fn-1
        ],
        out_specs=tuple([out_spec] * n_out),
        compiler_params=pltpu.CompilerParams(dimension_semantics=("parallel",)),
    )(wpack, prec, prec, foll, foll)

    shape5 = (B, T, C, H, W)
    if want_streams:
        fwd, bwd, comb = outs
        return {"pred": comb.reshape(shape5),
                "pred_forward": fwd.reshape(shape5),
                "pred_backward": bwd.reshape(shape5)}
    (comb,) = outs
    return {"pred": comb.reshape(shape5)}


if __name__ == "__main__":
    key = jax.random.PRNGKey(0)
    B, K, Fn, T, C, H, W = 2, 4, 4, 3, 3, 16, 16
    k1, k2 = jax.random.split(key)
    preceding = jax.random.uniform(k1, (B, K, C, H, W), jnp.float32, -1.0, 1.0)
    following = jax.random.uniform(k2, (B, Fn, C, H, W), jnp.float32, -1.0, 1.0)

    params = init_params(gf_dim=16, c_dim=C, feature_size=H)

    out = jax.jit(functools.partial(bi_twa_forward, T))(preceding, following, params)
    jax.block_until_ready(out)
    assert out["pred"].shape == (B, T, C, H, W)
    assert out["pred_forward"].shape == (B, T, C, H, W)
    assert out["pred_backward"].shape == (B, T, C, H, W)

    # Reduced-write path (only 'pred') must agree with the full path.
    pred_only = jax.jit(functools.partial(bi_twa_forward, T, want_streams=False))(
        preceding, following, params)
    jax.block_until_ready(pred_only)
    assert pred_only["pred"].shape == (B, T, C, H, W)
    assert jnp.allclose(pred_only["pred"], out["pred"], atol=1e-6)

    print("KERNEL_OK")
</pallas_src>

<mosaic_0001>
module attributes {stable_mosaic.version = 11 : i64} {
  func.func @_bi_twa_kernel(%arg0: i32, %arg1: memref<15xf32, #tpu.memory_space<smem>>, %arg2: memref<1x1x3x256xf32, #tpu.memory_space<vmem>>, %arg3: memref<1x1x3x256xf32, #tpu.memory_space<vmem>>, %arg4: memref<1x1x3x256xf32, #tpu.memory_space<vmem>>, %arg5: memref<1x1x3x256xf32, #tpu.memory_space<vmem>>, %arg6: memref<1x3x768xf32, #tpu.memory_space<vmem>>, %arg7: memref<1x3x768xf32, #tpu.memory_space<vmem>>, %arg8: memref<1x3x768xf32, #tpu.memory_space<vmem>>) attributes {dimension_semantics = [#tpu.dimension_semantics<parallel>], iteration_bounds = array<i64: 2>, scalar_prefetch = 0 : i64, scratch_operands = 0 : i64, tpu.core_type = #tpu.core_type<tc>, window_params = [{transform_indices = @transform_0, window_bounds = array<i64: 15>}, {transform_indices = @transform_1, window_bounds = array<i64: 1, 1, 3, 256>}, {transform_indices = @transform_2, window_bounds = array<i64: 1, 1, 3, 256>}, {transform_indices = @transform_3, window_bounds = array<i64: 1, 1, 3, 256>}, {transform_indices = @transform_4, window_bounds = array<i64: 1, 1, 3, 256>}, {transform_indices = @transform_5, window_bounds = array<i64: 1, 3, 768>}, {transform_indices = @transform_6, window_bounds = array<i64: 1, 3, 768>}, {transform_indices = @transform_7, window_bounds = array<i64: 1, 3, 768>}]} {
    %c0 = arith.constant 0 : index
    %c0_0 = arith.constant 0 : index
    %c0_1 = arith.constant 0 : index
    %c0_2 = arith.constant 0 : index
    %0 = vector.load %arg3[%c0, %c0_0, %c0_1, %c0_2] : memref<1x1x3x256xf32, #tpu.memory_space<vmem>>, vector<1x1x3x256xf32>
    %1 = vector.shape_cast %0 : vector<1x1x3x256xf32> to vector<1x3x256xf32>
    %c0_3 = arith.constant 0 : index
    %c0_4 = arith.constant 0 : index
    %c0_5 = arith.constant 0 : index
    %c0_6 = arith.constant 0 : index
    %2 = vector.load %arg4[%c0_3, %c0_4, %c0_5, %c0_6] : memref<1x1x3x256xf32, #tpu.memory_space<vmem>>, vector<1x1x3x256xf32>
    %3 = vector.shape_cast %2 : vector<1x1x3x256xf32> to vector<1x3x256xf32>
    %cst = arith.constant 1.000000e+00 : f32
    %4 = vector.broadcast %cst : f32 to vector<1x3x256xf32>
    %5 = arith.addf %1, %4 : vector<1x3x256xf32>
    %cst_7 = arith.constant 5.000000e-01 : f32
    %6 = vector.broadcast %cst_7 : f32 to vector<1x3x256xf32>
    %7 = arith.mulf %5, %6 : vector<1x3x256xf32>
    %8 = vector.extract_strided_slice %7 {offsets = [0, 0, 0], sizes = [1, 1, 256], strides = [1, 1, 1]} : vector<1x3x256xf32> to vector<1x1x256xf32>
    %9 = vector.shape_cast %8 : vector<1x1x256xf32> to vector<1x256xf32>
    %cst_8 = arith.constant 1.140000e-01 : f32
    %10 = vector.broadcast %cst_8 : f32 to vector<1x256xf32>
    %11 = arith.mulf %10, %9 : vector<1x256xf32>
    %12 = vector.extract_strided_slice %7 {offsets = [0, 1, 0], sizes = [1, 1, 256], strides = [1, 1, 1]} : vector<1x3x256xf32> to vector<1x1x256xf32>
    %13 = vector.shape_cast %12 : vector<1x1x256xf32> to vector<1x256xf32>
    %cst_9 = arith.constant 5.870000e-01 : f32
    %14 = vector.broadcast %cst_9 : f32 to vector<1x256xf32>
    %15 = arith.mulf %14, %13 : vector<1x256xf32>
    %16 = arith.addf %11, %15 : vector<1x256xf32>
    %17 = vector.extract_strided_slice %7 {offsets = [0, 2, 0], sizes = [1, 1, 256], strides = [1, 1, 1]} : vector<1x3x256xf32> to vector<1x1x256xf32>
    %18 = vector.shape_cast %17 : vector<1x1x256xf32> to vector<1x256xf32>
    %cst_10 = arith.constant 2.990000e-01 : f32
    %19 = vector.broadcast %cst_10 : f32 to vector<1x256xf32>
    %20 = arith.mulf %19, %18 : vector<1x256xf32>
    %21 = arith.addf %16, %20 : vector<1x256xf32>
    %c0_11 = arith.constant 0 : index
    %c0_12 = arith.constant 0 : index
    %c0_13 = arith.constant 0 : index
    %c0_14 = arith.constant 0 : index
    %22 = vector.load %arg2[%c0_11, %c0_12, %c0_13, %c0_14] : memref<1x1x3x256xf32, #tpu.memory_space<vmem>>, vector<1x1x3x256xf32>
    %23 = vector.shape_cast %22 : vector<1x1x3x256xf32> to vector<1x3x256xf32>
    %cst_15 = arith.constant 1.000000e+00 : f32
    %24 = vector.broadcast %cst_15 : f32 to vector<1x3x256xf32>
    %25 = arith.addf %23, %24 : vector<1x3x256xf32>
    %cst_16 = arith.constant 5.000000e-01 : f32
    %26 = vector.broadcast %cst_16 : f32 to vector<1x3x256xf32>
    %27 = arith.mulf %25, %26 : vector<1x3x256xf32>
    %28 = vector.extract_strided_slice %27 {offsets = [0, 0, 0], sizes = [1, 1, 256], strides = [1, 1, 1]} : vector<1x3x256xf32> to vector<1x1x256xf32>
    %29 = vector.shape_cast %28 : vector<1x1x256xf32> to vector<1x256xf32>
    %cst_17 = arith.constant 1.140000e-01 : f32
    %30 = vector.broadcast %cst_17 : f32 to vector<1x256xf32>
    %31 = arith.mulf %30, %29 : vector<1x256xf32>
    %32 = vector.extract_strided_slice %27 {offsets = [0, 1, 0], sizes = [1, 1, 256], strides = [1, 1, 1]} : vector<1x3x256xf32> to vector<1x1x256xf32>
    %33 = vector.shape_cast %32 : vector<1x1x256xf32> to vector<1x256xf32>
    %cst_18 = arith.constant 5.870000e-01 : f32
    %34 = vector.broadcast %cst_18 : f32 to vector<1x256xf32>
    %35 = arith.mulf %34, %33 : vector<1x256xf32>
    %36 = arith.addf %31, %35 : vector<1x256xf32>
    %37 = vector.extract_strided_slice %27 {offsets = [0, 2, 0], sizes = [1, 1, 256], strides = [1, 1, 1]} : vector<1x3x256xf32> to vector<1x1x256xf32>
    %38 = vector.shape_cast %37 : vector<1x1x256xf32> to vector<1x256xf32>
    %cst_19 = arith.constant 2.990000e-01 : f32
    %39 = vector.broadcast %cst_19 : f32 to vector<1x256xf32>
    %40 = arith.mulf %39, %38 : vector<1x256xf32>
    %41 = arith.addf %36, %40 : vector<1x256xf32>
    %42 = arith.subf %21, %41 : vector<1x256xf32>
    %cst_20 = arith.constant 0.333333343 : f32
    %43 = vector.broadcast %cst_20 : f32 to vector<1x256xf32>
    %44 = arith.mulf %42, %43 : vector<1x256xf32>
    %cst_21 = arith.constant 1.000000e+00 : f32
    %45 = vector.broadcast %cst_21 : f32 to vector<1x3x256xf32>
    %46 = arith.addf %3, %45 : vector<1x3x256xf32>
    %cst_22 = arith.constant 5.000000e-01 : f32
    %47 = vector.broadcast %cst_22 : f32 to vector<1x3x256xf32>
    %48 = arith.mulf %46, %47 : vector<1x3x256xf32>
    %49 = vector.extract_strided_slice %48 {offsets = [0, 0, 0], sizes = [1, 1, 256], strides = [1, 1, 1]} : vector<1x3x256xf32> to vector<1x1x256xf32>
    %50 = vector.shape_cast %49 : vector<1x1x256xf32> to vector<1x256xf32>
    %cst_23 = arith.constant 1.140000e-01 : f32
    %51 = vector.broadcast %cst_23 : f32 to vector<1x256xf32>
    %52 = arith.mulf %51, %50 : vector<1x256xf32>
    %53 = vector.extract_strided_slice %48 {offsets = [0, 1, 0], sizes = [1, 1, 256], strides = [1, 1, 1]} : vector<1x3x256xf32> to vector<1x1x256xf32>
    %54 = vector.shape_cast %53 : vector<1x1x256xf32> to vector<1x256xf32>
    %cst_24 = arith.constant 5.870000e-01 : f32
    %55 = vector.broadcast %cst_24 : f32 to vector<1x256xf32>
    %56 = arith.mulf %55, %54 : vector<1x256xf32>
    %57 = arith.addf %52, %56 : vector<1x256xf32>
    %58 = vector.extract_strided_slice %48 {offsets = [0, 2, 0], sizes = [1, 1, 256], strides = [1, 1, 1]} : vector<1x3x256xf32> to vector<1x1x256xf32>
    %59 = vector.shape_cast %58 : vector<1x1x256xf32> to vector<1x256xf32>
    %cst_25 = arith.constant 2.990000e-01 : f32
    %60 = vector.broadcast %cst_25 : f32 to vector<1x256xf32>
    %61 = arith.mulf %60, %59 : vector<1x256xf32>
    %62 = arith.addf %57, %61 : vector<1x256xf32>
    %c0_26 = arith.constant 0 : index
    %c0_27 = arith.constant 0 : index
    %c0_28 = arith.constant 0 : index
    %c0_29 = arith.constant 0 : index
    %63 = vector.load %arg5[%c0_26, %c0_27, %c0_28, %c0_29] : memref<1x1x3x256xf32, #tpu.memory_space<vmem>>, vector<1x1x3x256xf32>
    %64 = vector.shape_cast %63 : vector<1x1x3x256xf32> to vector<1x3x256xf32>
    %cst_30 = arith.constant 1.000000e+00 : f32
    %65 = vector.broadcast %cst_30 : f32 to vector<1x3x256xf32>
    %66 = arith.addf %64, %65 : vector<1x3x256xf32>
    %cst_31 = arith.constant 5.000000e-01 : f32
    %67 = vector.broadcast %cst_31 : f32 to vector<1x3x256xf32>
    %68 = arith.mulf %66, %67 : vector<1x3x256xf32>
    %69 = vector.extract_strided_slice %68 {offsets = [0, 0, 0], sizes = [1, 1, 256], strides = [1, 1, 1]} : vector<1x3x256xf32> to vector<1x1x256xf32>
    %70 = vector.shape_cast %69 : vector<1x1x256xf32> to vector<1x256xf32>
    %cst_32 = arith.constant 1.140000e-01 : f32
    %71 = vector.broadcast %cst_32 : f32 to vector<1x256xf32>
    %72 = arith.mulf %71, %70 : vector<1x256xf32>
    %73 = vector.extract_strided_slice %68 {offsets = [0, 1, 0], sizes = [1, 1, 256], strides = [1, 1, 1]} : vector<1x3x256xf32> to vector<1x1x256xf32>
    %74 = vector.shape_cast %73 : vector<1x1x256xf32> to vector<1x256xf32>
    %cst_33 = arith.constant 5.870000e-01 : f32
    %75 = vector.broadcast %cst_33 : f32 to vector<1x256xf32>
    %76 = arith.mulf %75, %74 : vector<1x256xf32>
    %77 = arith.addf %72, %76 : vector<1x256xf32>
    %78 = vector.extract_strided_slice %68 {offsets = [0, 2, 0], sizes = [1, 1, 256], strides = [1, 1, 1]} : vector<1x3x256xf32> to vector<1x1x256xf32>
    %79 = vector.shape_cast %78 : vector<1x1x256xf32> to vector<1x256xf32>
    %cst_34 = arith.constant 2.990000e-01 : f32
    %80 = vector.broadcast %cst_34 : f32 to vector<1x256xf32>
    %81 = arith.mulf %80, %79 : vector<1x256xf32>
    %82 = arith.addf %77, %81 : vector<1x256xf32>
    %83 = arith.subf %62, %82 : vector<1x256xf32>
    %cst_35 = arith.constant 0.333333343 : f32
    %84 = vector.broadcast %cst_35 : f32 to vector<1x256xf32>
    %85 = arith.mulf %83, %84 : vector<1x256xf32>
    %86 = tpu.iota {dimensions = array<i32: 1>} : vector<1x3x1xi32>
    %87 = arith.sitofp %86 : vector<1x3x1xi32> to vector<1x3x1xf32>
    %cst_36 = arith.constant 1.000000e+00 : f32
    %88 = vector.broadcast %cst_36 : f32 to vector<1x3x1xf32>
    %89 = arith.addf %87, %88 : vector<1x3x1xf32>
    %cst_37 = arith.constant 3.000000e+00 : f32
    %90 = vector.broadcast %cst_37 : f32 to vector<1x3x1xf32>
    %91 = arith.subf %90, %87 : vector<1x3x1xf32>
    %cst_38 = arith.constant 2.500000e-01 : f32
    %92 = vector.broadcast %cst_38 : f32 to vector<1x3x1xf32>
    %93 = arith.mulf %89, %92 : vector<1x3x1xf32>
    %c12 = arith.constant 12 : index
    %94 = memref.load %arg1[%c12] : memref<15xf32, #tpu.memory_space<smem>>
    %95 = vector.extract_strided_slice %1 {offsets = [0, 0, 0], sizes = [1, 1, 256], strides = [1, 1, 1]} : vector<1x3x256xf32> to vector<1x1x256xf32>
    %96 = vector.shape_cast %95 : vector<1x1x256xf32> to vector<1x256xf32>
    %c0_39 = arith.constant 0 : index
    %97 = memref.load %arg1[%c0_39] : memref<15xf32, #tpu.memory_space<smem>>
    %98 = vector.broadcast %97 : f32 to vector<1x256xf32>
    %99 = arith.mulf %96, %98 : vector<1x256xf32>
    %100 = vector.extract_strided_slice %3 {offsets = [0, 0, 0], sizes = [1, 1, 256], strides = [1, 1, 1]} : vector<1x3x256xf32> to vector<1x1x256xf32>
    %101 = vector.shape_cast %100 : vector<1x1x256xf32> to vector<1x256xf32>
    %c0_40 = arith.constant 0 : index
    %102 = memref.load %arg1[%c0_40] : memref<15xf32, #tpu.memory_space<smem>>
    %103 = vector.broadcast %102 : f32 to vector<1x256xf32>
    %104 = arith.mulf %101, %103 : vector<1x256xf32>
    %c3 = arith.constant 3 : index
    %105 = memref.load %arg1[%c3] : memref<15xf32, #tpu.memory_space<smem>>
    %106 = vector.extract_strided_slice %1 {offsets = [0, 1, 0], sizes = [1, 1, 256], strides = [1, 1, 1]} : vector<1x3x256xf32> to vector<1x1x256xf32>
    %107 = vector.shape_cast %106 : vector<1x1x256xf32> to vector<1x256xf32>
    %108 = vector.broadcast %105 : f32 to vector<1x256xf32>
    %109 = arith.mulf %107, %108 : vector<1x256xf32>
    %110 = arith.addf %99, %109 : vector<1x256xf32>
    %111 = vector.extract_strided_slice %3 {offsets = [0, 1, 0], sizes = [1, 1, 256], strides = [1, 1, 1]} : vector<1x3x256xf32> to vector<1x1x256xf32>
    %112 = vector.shape_cast %111 : vector<1x1x256xf32> to vector<1x256xf32>
    %113 = vector.broadcast %105 : f32 to vector<1x256xf32>
    %114 = arith.mulf %112, %113 : vector<1x256xf32>
    %115 = arith.addf %104, %114 : vector<1x256xf32>
    %c6 = arith.constant 6 : index
    %116 = memref.load %arg1[%c6] : memref<15xf32, #tpu.memory_space<smem>>
    %117 = vector.extract_strided_slice %1 {offsets = [0, 2, 0], sizes = [1, 1, 256], strides = [1, 1, 1]} : vector<1x3x256xf32> to vector<1x1x256xf32>
    %118 = vector.shape_cast %117 : vector<1x1x256xf32> to vector<1x256xf32>
    %119 = vector.broadcast %116 : f32 to vector<1x256xf32>
    %120 = arith.mulf %118, %119 : vector<1x256xf32>
    %121 = arith.addf %110, %120 : vector<1x256xf32>
    %122 = vector.extract_strided_slice %3 {offsets = [0, 2, 0], sizes = [1, 1, 256], strides = [1, 1, 1]} : vector<1x3x256xf32> to vector<1x1x256xf32>
    %123 = vector.shape_cast %122 : vector<1x1x256xf32> to vector<1x256xf32>
    %124 = vector.broadcast %116 : f32 to vector<1x256xf32>
    %125 = arith.mulf %123, %124 : vector<1x256xf32>
    %126 = arith.addf %115, %125 : vector<1x256xf32>
    %127 = vector.broadcast %94 : f32 to vector<1x256xf32>
    %128 = arith.addf %121, %127 : vector<1x256xf32>
    %129 = vector.broadcast %94 : f32 to vector<1x256xf32>
    %130 = arith.addf %126, %129 : vector<1x256xf32>
    %c9 = arith.constant 9 : index
    %131 = memref.load %arg1[%c9] : memref<15xf32, #tpu.memory_space<smem>>
    %132 = vector.broadcast %131 : f32 to vector<1x256xf32>
    %133 = arith.mulf %44, %132 : vector<1x256xf32>
    %134 = vector.broadcast %131 : f32 to vector<1x256xf32>
    %135 = arith.mulf %85, %134 : vector<1x256xf32>
    %136 = vector.shape_cast %128 : vector<1x256xf32> to vector<1x1x256xf32>
    %137 = vector.shape_cast %133 : vector<1x256xf32> to vector<1x1x256xf32>
    %138 = vector.broadcast %89 : vector<1x3x1xf32> to vector<1x3x256xf32>
    %139 = vector.broadcast %137 : vector<1x1x256xf32> to vector<1x3x256xf32>
    %140 = arith.mulf %138, %139 : vector<1x3x256xf32>
    %141 = vector.broadcast %136 : vector<1x1x256xf32> to vector<1x3x256xf32>
    %142 = arith.addf %141, %140 : vector<1x3x256xf32>
    %143 = math.tanh %142 : vector<1x3x256xf32>
    %144 = vector.shape_cast %130 : vector<1x256xf32> to vector<1x1x256xf32>
    %145 = vector.shape_cast %135 : vector<1x256xf32> to vector<1x1x256xf32>
    %146 = vector.broadcast %91 : vector<1x3x1xf32> to vector<1x3x256xf32>
    %147 = vector.broadcast %145 : vector<1x1x256xf32> to vector<1x3x256xf32>
    %148 = arith.mulf %146, %147 : vector<1x3x256xf32>
    %149 = vector.broadcast %144 : vector<1x1x256xf32> to vector<1x3x256xf32>
    %150 = arith.addf %149, %148 : vector<1x3x256xf32>
    %151 = math.tanh %150 : vector<1x3x256xf32>
    %152 = arith.subf %151, %143 : vector<1x3x256xf32>
    %153 = vector.broadcast %93 : vector<1x3x1xf32> to vector<1x3x256xf32>
    %154 = arith.mulf %153, %152 : vector<1x3x256xf32>
    %155 = arith.addf %143, %154 : vector<1x3x256xf32>
    %c0_41 = arith.constant 0 : index
    %c0_42 = arith.constant 0 : index
    %c0_43 = arith.constant 0 : index
    %156 = vector.load %arg6[%c0_41, %c0_42, %c0_43] : memref<1x3x768xf32, #tpu.memory_space<vmem>>, vector<1x3x256xf32>
    tpu.vector_store %arg6[%c0_41, %c0_42, %c0_43], %143 {strides = array<i32>} : memref<1x3x768xf32, #tpu.memory_space<vmem>>, vector<1x3x256xf32>,
    %c0_44 = arith.constant 0 : index
    %c0_45 = arith.constant 0 : index
    %c0_46 = arith.constant 0 : index
    %157 = vector.load %arg7[%c0_44, %c0_45, %c0_46] : memref<1x3x768xf32, #tpu.memory_space<vmem>>, vector<1x3x256xf32>
    tpu.vector_store %arg7[%c0_44, %c0_45, %c0_46], %151 {strides = array<i32>} : memref<1x3x768xf32, #tpu.memory_space<vmem>>, vector<1x3x256xf32>,
    %c0_47 = arith.constant 0 : index
    %c0_48 = arith.constant 0 : index
    %c0_49 = arith.constant 0 : index
    %158 = vector.load %arg8[%c0_47, %c0_48, %c0_49] : memref<1x3x768xf32, #tpu.memory_space<vmem>>, vector<1x3x256xf32>
    tpu.vector_store %arg8[%c0_47, %c0_48, %c0_49], %155 {strides = array<i32>} : memref<1x3x768xf32, #tpu.memory_space<vmem>>, vector<1x3x256xf32>,
    %c13 = arith.constant 13 : index
    %159 = memref.load %arg1[%c13] : memref<15xf32, #tpu.memory_space<smem>>
    %160 = vector.extract_strided_slice %1 {offsets = [0, 0, 0], sizes = [1, 1, 256], strides = [1, 1, 1]} : vector<1x3x256xf32> to vector<1x1x256xf32>
    %161 = vector.shape_cast %160 : vector<1x1x256xf32> to vector<1x256xf32>
    %c1 = arith.constant 1 : index
    %162 = memref.load %arg1[%c1] : memref<15xf32, #tpu.memory_space<smem>>
    %163 = vector.broadcast %162 : f32 to vector<1x256xf32>
    %164 = arith.mulf %161, %163 : vector<1x256xf32>
    %165 = vector.extract_strided_slice %3 {offsets = [0, 0, 0], sizes = [1, 1, 256], strides = [1, 1, 1]} : vector<1x3x256xf32> to vector<1x1x256xf32>
    %166 = vector.shape_cast %165 : vector<1x1x256xf32> to vector<1x256xf32>
    %c1_50 = arith.constant 1 : index
    %167 = memref.load %arg1[%c1_50] : memref<15xf32, #tpu.memory_space<smem>>
    %168 = vector.broadcast %167 : f32 to vector<1x256xf32>
    %169 = arith.mulf %166, %168 : vector<1x256xf32>
    %c4 = arith.constant 4 : index
    %170 = memref.load %arg1[%c4] : memref<15xf32, #tpu.memory_space<smem>>
    %171 = vector.extract_strided_slice %1 {offsets = [0, 1, 0], sizes = [1, 1, 256], strides = [1, 1, 1]} : vector<1x3x256xf32> to vector<1x1x256xf32>
    %172 = vector.shape_cast %171 : vector<1x1x256xf32> to vector<1x256xf32>
    %173 = vector.broadcast %170 : f32 to vector<1x256xf32>
    %174 = arith.mulf %172, %173 : vector<1x256xf32>
    %175 = arith.addf %164, %174 : vector<1x256xf32>
    %176 = vector.extract_strided_slice %3 {offsets = [0, 1, 0], sizes = [1, 1, 256], strides = [1, 1, 1]} : vector<1x3x256xf32> to vector<1x1x256xf32>
    %177 = vector.shape_cast %176 : vector<1x1x256xf32> to vector<1x256xf32>
    %178 = vector.broadcast %170 : f32 to vector<1x256xf32>
    %179 = arith.mulf %177, %178 : vector<1x256xf32>
    %180 = arith.addf %169, %179 : vector<1x256xf32>
    %c7 = arith.constant 7 : index
    %181 = memref.load %arg1[%c7] : memref<15xf32, #tpu.memory_space<smem>>
    %182 = vector.extract_strided_slice %1 {offsets = [0, 2, 0], sizes = [1, 1, 256], strides = [1, 1, 1]} : vector<1x3x256xf32> to vector<1x1x256xf32>
    %183 = vector.shape_cast %182 : vector<1x1x256xf32> to vector<1x256xf32>
    %184 = vector.broadcast %181 : f32 to vector<1x256xf32>
    %185 = arith.mulf %183, %184 : vector<1x256xf32>
    %186 = arith.addf %175, %185 : vector<1x256xf32>
    %187 = vector.extract_strided_slice %3 {offsets = [0, 2, 0], sizes = [1, 1, 256], strides = [1, 1, 1]} : vector<1x3x256xf32> to vector<1x1x256xf32>
    %188 = vector.shape_cast %187 : vector<1x1x256xf32> to vector<1x256xf32>
    %189 = vector.broadcast %181 : f32 to vector<1x256xf32>
    %190 = arith.mulf %188, %189 : vector<1x256xf32>
    %191 = arith.addf %180, %190 : vector<1x256xf32>
    %192 = vector.broadcast %159 : f32 to vector<1x256xf32>
    %193 = arith.addf %186, %192 : vector<1x256xf32>
    %194 = vector.broadcast %159 : f32 to vector<1x256xf32>
    %195 = arith.addf %191, %194 : vector<1x256xf32>
    %c10 = arith.constant 10 : index
    %196 = memref.load %arg1[%c10] : memref<15xf32, #tpu.memory_space<smem>>
    %197 = vector.broadcast %196 : f32 to vector<1x256xf32>
    %198 = arith.mulf %44, %197 : vector<1x256xf32>
    %199 = vector.broadcast %196 : f32 to vector<1x256xf32>
    %200 = arith.mulf %85, %199 : vector<1x256xf32>
    %201 = vector.shape_cast %193 : vector<1x256xf32> to vector<1x1x256xf32>
    %202 = vector.shape_cast %198 : vector<1x256xf32> to vector<1x1x256xf32>
    %203 = vector.broadcast %89 : vector<1x3x1xf32> to vector<1x3x256xf32>
    %204 = vector.broadcast %202 : vector<1x1x256xf32> to vector<1x3x256xf32>
    %205 = arith.mulf %203, %204 : vector<1x3x256xf32>
    %206 = vector.broadcast %201 : vector<1x1x256xf32> to vector<1x3x256xf32>
    %207 = arith.addf %206, %205 : vector<1x3x256xf32>
    %208 = math.tanh %207 : vector<1x3x256xf32>
    %209 = vector.shape_cast %195 : vector<1x256xf32> to vector<1x1x256xf32>
    %210 = vector.shape_cast %200 : vector<1x256xf32> to vector<1x1x256xf32>
    %211 = vector.broadcast %91 : vector<1x3x1xf32> to vector<1x3x256xf32>
    %212 = vector.broadcast %210 : vector<1x1x256xf32> to vector<1x3x256xf32>
    %213 = arith.mulf %211, %212 : vector<1x3x256xf32>
    %214 = vector.broadcast %209 : vector<1x1x256xf32> to vector<1x3x256xf32>
    %215 = arith.addf %214, %213 : vector<1x3x256xf32>
    %216 = math.tanh %215 : vector<1x3x256xf32>
    %217 = arith.subf %216, %208 : vector<1x3x256xf32>
    %218 = vector.broadcast %93 : vector<1x3x1xf32> to vector<1x3x256xf32>
    %219 = arith.mulf %218, %217 : vector<1x3x256xf32>
    %220 = arith.addf %208, %219 : vector<1x3x256xf32>
    %c0_51 = arith.constant 0 : index
    %c0_52 = arith.constant 0 : index
    %c256 = arith.constant 256 : index
    %221 = vector.load %arg6[%c0_51, %c0_52, %c256] : memref<1x3x768xf32, #tpu.memory_space<vmem>>, vector<1x3x256xf32>
    tpu.vector_store %arg6[%c0_51, %c0_52, %c256], %208 {strides = array<i32>} : memref<1x3x768xf32, #tpu.memory_space<vmem>>, vector<1x3x256xf32>,
    %c0_53 = arith.constant 0 : index
    %c0_54 = arith.constant 0 : index
    %c256_55 = arith.constant 256 : index
    %222 = vector.load %arg7[%c0_53, %c0_54, %c256_55] : memref<1x3x768xf32, #tpu.memory_space<vmem>>, vector<1x3x256xf32>
    tpu.vector_store %arg7[%c0_53, %c0_54, %c256_55], %216 {strides = array<i32>} : memref<1x3x768xf32, #tpu.memory_space<vmem>>, vector<1x3x256xf32>,
    %c0_56 = arith.constant 0 : index
    %c0_57 = arith.constant 0 : index
    %c256_58 = arith.constant 256 : index
    %223 = vector.load %arg8[%c0_56, %c0_57, %c256_58] : memref<1x3x768xf32, #tpu.memory_space<vmem>>, vector<1x3x256xf32>
    tpu.vector_store %arg8[%c0_56, %c0_57, %c256_58], %220 {strides = array<i32>} : memref<1x3x768xf32, #tpu.memory_space<vmem>>, vector<1x3x256xf32>,
    %c14 = arith.constant 14 : index
    %224 = memref.load %arg1[%c14] : memref<15xf32, #tpu.memory_space<smem>>
    %225 = vector.extract_strided_slice %1 {offsets = [0, 0, 0], sizes = [1, 1, 256], strides = [1, 1, 1]} : vector<1x3x256xf32> to vector<1x1x256xf32>
    %226 = vector.shape_cast %225 : vector<1x1x256xf32> to vector<1x256xf32>
    %c2 = arith.constant 2 : index
    %227 = memref.load %arg1[%c2] : memref<15xf32, #tpu.memory_space<smem>>
    %228 = vector.broadcast %227 : f32 to vector<1x256xf32>
    %229 = arith.mulf %226, %228 : vector<1x256xf32>
    %230 = vector.extract_strided_slice %3 {offsets = [0, 0, 0], sizes = [1, 1, 256], strides = [1, 1, 1]} : vector<1x3x256xf32> to vector<1x1x256xf32>
    %231 = vector.shape_cast %230 : vector<1x1x256xf32> to vector<1x256xf32>
    %c2_59 = arith.constant 2 : index
    %232 = memref.load %arg1[%c2_59] : memref<15xf32, #tpu.memory_space<smem>>
    %233 = vector.broadcast %232 : f32 to vector<1x256xf32>
    %234 = arith.mulf %231, %233 : vector<1x256xf32>
    %c5 = arith.constant 5 : index
    %235 = memref.load %arg1[%c5] : memref<15xf32, #tpu.memory_space<smem>>
    %236 = vector.extract_strided_slice %1 {offsets = [0, 1, 0], sizes = [1, 1, 256], strides = [1, 1, 1]} : vector<1x3x256xf32> to vector<1x1x256xf32>
    %237 = vector.shape_cast %236 : vector<1x1x256xf32> to vector<1x256xf32>
    %238 = vector.broadcast %235 : f32 to vector<1x256xf32>
    %239 = arith.mulf %237, %238 : vector<1x256xf32>
    %240 = arith.addf %229, %239 : vector<1x256xf32>
    %241 = vector.extract_strided_slice %3 {offsets = [0, 1, 0], sizes = [1, 1, 256], strides = [1, 1, 1]} : vector<1x3x256xf32> to vector<1x1x256xf32>
    %242 = vector.shape_cast %241 : vector<1x1x256xf32> to vector<1x256xf32>
    %243 = vector.broadcast %235 : f32 to vector<1x256xf32>
    %244 = arith.mulf %242, %243 : vector<1x256xf32>
    %245 = arith.addf %234, %244 : vector<1x256xf32>
    %c8 = arith.constant 8 : index
    %246 = memref.load %arg1[%c8] : memref<15xf32, #tpu.memory_space<smem>>
    %247 = vector.extract_strided_slice %1 {offsets = [0, 2, 0], sizes = [1, 1, 256], strides = [1, 1, 1]} : vector<1x3x256xf32> to vector<1x1x256xf32>
    %248 = vector.shape_cast %247 : vector<1x1x256xf32> to vector<1x256xf32>
    %249 = vector.broadcast %246 : f32 to vector<1x256xf32>
    %250 = arith.mulf %248, %249 : vector<1x256xf32>
    %251 = arith.addf %240, %250 : vector<1x256xf32>
    %252 = vector.extract_strided_slice %3 {offsets = [0, 2, 0], sizes = [1, 1, 256], strides = [1, 1, 1]} : vector<1x3x256xf32> to vector<1x1x256xf32>
    %253 = vector.shape_cast %252 : vector<1x1x256xf32> to vector<1x256xf32>
    %254 = vector.broadcast %246 : f32 to vector<1x256xf32>
    %255 = arith.mulf %253, %254 : vector<1x256xf32>
    %256 = arith.addf %245, %255 : vector<1x256xf32>
    %257 = vector.broadcast %224 : f32 to vector<1x256xf32>
    %258 = arith.addf %251, %257 : vector<1x256xf32>
    %259 = vector.broadcast %224 : f32 to vector<1x256xf32>
    %260 = arith.addf %256, %259 : vector<1x256xf32>
    %c11 = arith.constant 11 : index
    %261 = memref.load %arg1[%c11] : memref<15xf32, #tpu.memory_space<smem>>
    %262 = vector.broadcast %261 : f32 to vector<1x256xf32>
    %263 = arith.mulf %44, %262 : vector<1x256xf32>
    %264 = vector.broadcast %261 : f32 to vector<1x256xf32>
    %265 = arith.mulf %85, %264 : vector<1x256xf32>
    %266 = vector.shape_cast %258 : vector<1x256xf32> to vector<1x1x256xf32>
    %267 = vector.shape_cast %263 : vector<1x256xf32> to vector<1x1x256xf32>
    %268 = vector.broadcast %89 : vector<1x3x1xf32> to vector<1x3x256xf32>
    %269 = vector.broadcast %267 : vector<1x1x256xf32> to vector<1x3x256xf32>
    %270 = arith.mulf %268, %269 : vector<1x3x256xf32>
    %271 = vector.broadcast %266 : vector<1x1x256xf32> to vector<1x3x256xf32>
    %272 = arith.addf %271, %270 : vector<1x3x256xf32>
    %273 = math.tanh %272 : vector<1x3x256xf32>
    %274 = vector.shape_cast %260 : vector<1x256xf32> to vector<1x1x256xf32>
    %275 = vector.shape_cast %265 : vector<1x256xf32> to vector<1x1x256xf32>
    %276 = vector.broadcast %91 : vector<1x3x1xf32> to vector<1x3x256xf32>
    %277 = vector.broadcast %275 : vector<1x1x256xf32> to vector<1x3x256xf32>
    %278 = arith.mulf %276, %277 : vector<1x3x256xf32>
    %279 = vector.broadcast %274 : vector<1x1x256xf32> to vector<1x3x256xf32>
    %280 = arith.addf %279, %278 : vector<1x3x256xf32>
    %281 = math.tanh %280 : vector<1x3x256xf32>
    %282 = arith.subf %281, %273 : vector<1x3x256xf32>
    %283 = vector.broadcast %93 : vector<1x3x1xf32> to vector<1x3x256xf32>
    %284 = arith.mulf %283, %282 : vector<1x3x256xf32>
    %285 = arith.addf %273, %284 : vector<1x3x256xf32>
    %c0_60 = arith.constant 0 : index
    %c0_61 = arith.constant 0 : index
    %c512 = arith.constant 512 : index
    %286 = vector.load %arg6[%c0_60, %c0_61, %c512] : memref<1x3x768xf32, #tpu.memory_space<vmem>>, vector<1x3x256xf32>
    tpu.vector_store %arg6[%c0_60, %c0_61, %c512], %273 {strides = array<i32>} : memref<1x3x768xf32, #tpu.memory_space<vmem>>, vector<1x3x256xf32>,
    %c0_62 = arith.constant 0 : index
    %c0_63 = arith.constant 0 : index
    %c512_64 = arith.constant 512 : index
    %287 = vector.load %arg7[%c0_62, %c0_63, %c512_64] : memref<1x3x768xf32, #tpu.memory_space<vmem>>, vector<1x3x256xf32>
    tpu.vector_store %arg7[%c0_62, %c0_63, %c512_64], %281 {strides = array<i32>} : memref<1x3x768xf32, #tpu.memory_space<vmem>>, vector<1x3x256xf32>,
    %c0_65 = arith.constant 0 : index
    %c0_66 = arith.constant 0 : index
    %c512_67 = arith.constant 512 : index
    %288 = vector.load %arg8[%c0_65, %c0_66, %c512_67] : memref<1x3x768xf32, #tpu.memory_space<vmem>>, vector<1x3x256xf32>
    tpu.vector_store %arg8[%c0_65, %c0_66, %c512_67], %285 {strides = array<i32>} : memref<1x3x768xf32, #tpu.memory_space<vmem>>, vector<1x3x256xf32>,
    return
  }
  func.func @transform_0(%arg0: i32) -> i32 {
    %c0_i32 = arith.constant 0 : i32
    %c0_i32_0 = arith.constant 0 : i32
    return %c0_i32 : i32
  }
  func.func @transform_1(%arg0: i32) -> (i32, i32, i32, i32) {
    %c0_i32 = arith.constant 0 : i32
    %c0_i32_0 = arith.constant 0 : i32
    %c0_i32_1 = arith.constant 0 : i32
    %c0_i32_2 = arith.constant 0 : i32
    return %arg0, %c0_i32, %c0_i32_0, %c0_i32_1 : i32, i32, i32, i32
  }
  func.func @transform_2(%arg0: i32) -> (i32, i32, i32, i32) {
    %c3_i32 = arith.constant 3 : i32
    %c0_i32 = arith.constant 0 : i32
    %c0_i32_0 = arith.constant 0 : i32
    %c0_i32_1 = arith.constant 0 : i32
    return %arg0, %c3_i32, %c0_i32, %c0_i32_0 : i32, i32, i32, i32
  }
  func.func @transform_3(%arg0: i32) -> (i32, i32, i32, i32) {
    %c0_i32 = arith.constant 0 : i32
    %c0_i32_0 = arith.constant 0 : i32
    %c0_i32_1 = arith.constant 0 : i32
    %c0_i32_2 = arith.constant 0 : i32
    return %arg0, %c0_i32, %c0_i32_0, %c0_i32_1 : i32, i32, i32, i32
  }
  func.func @transform_4(%arg0: i32) -> (i32, i32, i32, i32) {
    %c3_i32 = arith.constant 3 : i32
    %c0_i32 = arith.constant 0 : i32
    %c0_i32_0 = arith.constant 0 : i32
    %c0_i32_1 = arith.constant 0 : i32
    return %arg0, %c3_i32, %c0_i32, %c0_i32_0 : i32, i32, i32, i32
  }
  func.func @transform_5(%arg0: i32) -> (i32, i32, i32) {
    %c0_i32 = arith.constant 0 : i32
    %c0_i32_0 = arith.constant 0 : i32
    %c0_i32_1 = arith.constant 0 : i32
    return %arg0, %c0_i32, %c0_i32_0 : i32, i32, i32
  }
  func.func @transform_6(%arg0: i32) -> (i32, i32, i32) {
    %c0_i32 = arith.constant 0 : i32
    %c0_i32_0 = arith.constant 0 : i32
    %c0_i32_1 = arith.constant 0 : i32
    return %arg0, %c0_i32, %c0_i32_0 : i32, i32, i32
  }
  func.func @transform_7(%arg0: i32) -> (i32, i32, i32) {
    %c0_i32 = arith.constant 0 : i32
    %c0_i32_0 = arith.constant 0 : i32
    %c0_i32_1 = arith.constant 0 : i32
    return %arg0, %c0_i32, %c0_i32_0 : i32, i32, i32
  }
}

</mosaic_0001>

<bundles_post_ra>
// kernel: bi_twa_forward.1
= control target key start
LH: loop header
LB: loop body
LE: loop exit
PB: predicated region body
PF: predicated region fallthrough
CT: control target
= control target key end

     0   :  { %13 = vsyncpa [#allocation3], 0  ;;  %s1258_s24 = smov 0   ;;  %s1520_s0 = inlined_call_operand.vmem [shape: f32[15], index: 0, kind: input, shape index: {}]   ;;  %s1521_s1 = inlined_call_operand.vmem [shape: f32[2,4,3,256], index: 1, kind: input, shape index: {}, may-alias: {1,2}]   ;;  %s1522_s2 = inlined_call_operand.vmem [shape: f32[2,4,3,256], index: 2, kind: input, shape index: {}, may-alias: {1,2}]   ;;  %s1523_s3 = inlined_call_operand.vmem [shape: f32[2,4,3,256], index: 3, kind: input, shape index: {}, may-alias: {3,4}]   ;;  %s1524_s4 = inlined_call_operand.vmem [shape: f32[2,4,3,256], index: 4, kind: input, shape index: {}, may-alias: {3,4}]   ;;  %s1525_s5 = inlined_call_operand.vmem [shape: f32[2,3,768], index: 5, kind: output, shape index: {0}]   ;;  %s1526_s6 = inlined_call_operand.vmem [shape: f32[2,3,768], index: 6, kind: output, shape index: {1}]   ;;  %s1527_s7 = inlined_call_operand.vmem [shape: f32[2,3,768], index: 7, kind: output, shape index: {2}]  }
   0x1 LB: > { %s1264_s25 = sadd.s32 4294967295, %s1215_s24   ;;  %p1088_p0 = scmp.ge.s32.totalorder %s1215_s24, 1  ;;  %s1215_s24 = sphi %s1258_s24, %s19_s24  }
   0x2   : > { %p227_p1 = scmp.lt.s32.totalorder %s1215_s24, 3  ;;  %s240_s28 = sshll.u32 %s1520_s0, 4  ;;  %s241_s28 = int_to_ptr.vmem [resolvable:$true] %s240_s28 }
   0x3   : > { %p1155_p3 = scmp.eq.s32.totalorder %s1264_s25, 0  ;;  %s1190_s30 = scalar_lea.vmem %s241_s28, 16 }
   0x4   : > { %p1271_p2 = pnand %p1088_p0, %p227_p1  ;;  %p1191_p6 = scmp.ne.s32.totalorder %s241_s28, %s1190_s30 }
   0x5   : > { %p1198_p10 = scmp.lt.s32.totalorder %s241_s28, %s241_s28  ;;  %p1199_p11 = scmp.lt.s32.totalorder %s1190_s30, %s1190_s30 }
   0x6   : > { %p1151_p4 = pneg %p1271_p2 }
   0x7   : > { %p1200_p12 = por %p1199_p11, %p1198_p10 }
   0x8   : > { %p1152_p5 = pnand %p1155_p3, %p1151_p4 }
   0xa   : > { %p1192_p7 = pneg %p1152_p5 }
   0xc   : > { %p1193_p8 = pnand %p1192_p7, %p1191_p6 }
   0xe   : > { %p1194_p9 = pneg %p1193_p8 }
  0x10   : > { %p1201_p13 = pnand %p1200_p12, %p1194_p9 }
  0x12   : > { %1204 = shalt.err (!%p1201_p13)
}
  0x13   : > { %s1217_s8 = smov [#allocation2]   ;;  %287 = sbr.rel (%p1271_p2) target bundleno = 111 (0x6f), region = 40 }
  0x14   : > { %1154 = dma.vmem_to_smem (!%p1152_p5), %s241_s28, 16, %s1217_s8, [#allocation3]  }
  0x1a   : > { %1210 = dma.done.wait (%p1155_p3), [#allocation3], 16  }
  0x1b   : > { %1212 = vsyncadd (%p1155_p3), [#allocation3], 4294967280 }
  0x1c   : > { %293 = sfence }
  0x1d   : > { %p347_p0 = scmp.lt.s32.totalorder %s1264_s25, 1  ;;  %v452_v0 = vlaneseq  ;;  %s1287_s9 = sld [smem:[#allocation2 + $0xc]] }
  0x1e   : > { %s1289_s10 = sld [smem:[#allocation2]]  ;;  %s1291_s11 = sld [smem:[#allocation2 + $0x3]] }
  0x1f   : > { %s1530_s25 = smov (!%p347_p0, %s1264_s25), 1  ;;  %v453_v1 = vshrl.u32 %v452_v0, 7  ;;  %s1296_s12 = sld [smem:[#allocation2 + $0x6]] }
  0x20   : > { %s1298_s13 = sld [smem:[#allocation2 + $0x9]]  ;;  %s1142_s14 = sshll.u32 %s1530_s25, 5 }
  0x21   : > { %v454_v2 = vcvt.s32.f32 %v453_v1  ;;  %s351_s17 = scalar_lea.vmem %s1521_s1, %s1142_s14  ;;  %s995_s20 = scalar_lea.vmem %s1522_s2, %s1142_s14  ;;  %v1307_v3 = vsub.s32 0, %v453_v1  ;;  %v1309_v4 = vsub.s32 4, %v453_v1 }
  0x22   : > { %s362_s23 = scalar_lea.vmem %s1523_s3, %s1142_s14  ;;  %s1001_s28 = scalar_lea.vmem %s1524_s4, %s1142_s14  ;;  %v1317_v5 = vld [vmem:[%s995_s20 + $0x18] sm:$0x77]  ;;  %v401_v6 = vld [vmem:[%s351_s17] sm:$0x77] }
  0x23   : > { %v1319_v7 = vadd.f32 1.0, %v454_v2  ;;  %v491_v8 = vstv %s1287_s9  ;;  %v1322_v9 = vsub.f32 3.0, %v454_v2  ;;  %v1324_v10 = vld [vmem:[%s362_s23] sm:$0x77]  ;;  %v386_v11 = vadd.f32 1.0, %v1317_v5  ;;  %s1332_s29 = sld [smem:[#allocation2 + $0xa]] }
  0x24   : > { %v402_v12 = vadd.f32 1.0, %v401_v6  ;;  %v1111_v13 = vld [vmem:[%s1001_s28 + $0x18] sm:$0x77]  ;;  %v460_v14 = vstv %s1289_s10  ;;  %v464_v15 = vstv %s1291_s11  ;;  %v419_v16 = vadd.f32 1.0, %v1324_v10  ;;  %s1336_s30 = sld [smem:[#allocation2 + $0xb]]  ;;  %s1338_s8 = sld [smem:[#allocation2 + $0xd]] }
  0x25   : > { %v435_v17 = vadd.f32 1.0, %v1111_v13  ;;  %v461_v18 = vmul.f32 %v1317_v5, %v460_v14  ;;  %v465_v19 = vmul.f32 %v1317_v5, %v464_v15  ;;  %v387_v20 = vmul.f32 0.5, %v386_v11  ;;  %s1341_s10 = sld [smem:[#allocation2 + $0x1]]  ;;  %s1345_s11 = sld [smem:[#allocation2 + $0x4]] }
  0x26   : > { %v403_v21 = vmul.f32 0.5, %v402_v12  ;;  %v478_v22 = vstv %s1296_s12  ;;  %v495_v23 = vstv %s1298_s13  ;;  %v420_v24 = vmul.f32 0.5, %v419_v16  ;;  %s1347_s12 = sld [smem:[#allocation2 + $0x7]]  ;;  %s1400_s9 = sld [smem:[#allocation2 + $0x2]] }
  0x27   : > { %v436_v25 = vmul.f32 0.5, %v435_v17  ;;  %v1116_v26 = vrot.slane %v465_v19, 9  ;;  %v479_v27 = vmul.f32 %v1317_v5, %v478_v22  ;;  %v388_v28 = vmul.f32 0.114, %v387_v20  ;;  %s1402_s14 = sld [smem:[#allocation2 + $0x5]]  ;;  %s1411_s13 = sld [smem:[#allocation2 + $0x8]] }
  0x28   : > { %v389_v29 = vmul.f32 0.587, %v387_v20  ;;  %v395_v30 = vmul.f32 0.299, %v387_v20  ;;  %v462_v31 = vmul.f32 %v460_v14, %v1324_v10  ;;  %v404_v32 = vmul.f32 0.114, %v403_v21 }
  0x29   : > { %v405_v33 = vmul.f32 0.587, %v403_v21  ;;  %v411_v34 = vmul.f32 0.299, %v403_v21  ;;  %v470_v35 = vadd.f32 %v1116_v26, %v461_v18  ;;  %v421_v38 = vmul.f32 0.114, %v420_v24 }
  0x2a   : > { %v1105_v36 = vrot.slane %v389_v29, 9  ;;  %v1106_v37 = vrot.slane %v395_v30, 10  ;;  %v422_v39 = vmul.f32 0.587, %v420_v24  ;;  %v428_v42 = vmul.f32 0.299, %v420_v24 }
  0x2b   : > { %v1107_v40 = vrot.slane %v405_v33, 9  ;;  %v1108_v41 = vrot.slane %v411_v34, 10  ;;  %v437_v43 = vmul.f32 0.114, %v436_v25  ;;  %v438_v46 = vmul.f32 0.587, %v436_v25 }
  0x2c   : > { %v394_v44 = vadd.f32 %v1105_v36, %v388_v28  ;;  %v1109_v45 = vrot.slane %v422_v39, 9  ;;  %v444_v47 = vmul.f32 0.299, %v436_v25  ;;  %v1110_v49 = vrot.slane %v428_v42, 10  ;;  %s1421_s15 = sld [smem:[#allocation2 + $0xe]]  ;;  %s1440_s16 = smul.u32 24, %s1530_s25 }
  0x2d   : > { %v410_v48 = vadd.f32 %v1107_v40, %v404_v32  ;;  %v1119_v50 = vrot.slane %v479_v27, 10  ;;  %v644_v51 = vstv %s1332_s29  ;;  %v1112_v54 = vrot.slane %v438_v46, 9 }
  0x2e   : > { %v400_v52 = vadd.f32 %v1106_v37, %v394_v44  ;;  %v427_v53 = vadd.f32 %v1109_v45, %v421_v38  ;;  %v1113_v55 = vrot.slane %v444_v47, 10  ;;  %v793_v58 = vstv %s1336_s30  ;;  %s1464_s18 = scalar_lea.vmem %s1525_s5, %s1440_s16  ;;  %s1481_s21 = scalar_lea.vmem %s1526_s6, %s1440_s16 }
  0x2f   : > { %v416_v56 = vadd.f32 %v1108_v41, %v410_v48  ;;  %v484_v57 = vadd.f32 %v1119_v50, %v470_v35  ;;  %v471_v59 = vmul.f32 %v464_v15, %v1324_v10  ;;  %v443_v61 = vadd.f32 %v1112_v54, %v437_v43  ;;  %s1498_s26 = scalar_lea.vmem %s1527_s7, %s1440_s16 }
  0x30   : > { %v433_v60 = vadd.f32 %v1110_v49, %v427_v53  ;;  %v485_v62 = vmul.f32 %v478_v22, %v1324_v10  ;;  %v1353_v63 = vmul.f32 0.25, %v1319_v7  ;;  %v609_v6 = vstv %s1341_s10 }
  0x31   : > { %v417_v0 = vsub.f32 %v400_v52, %v416_v56  ;;  %v492_v1 = vadd.f32 %v491_v8, %v484_v57  ;;  %v1117_v2 = vrot.slane %v471_v59, 9  ;;  %v449_v11 = vadd.f32 %v1113_v55, %v443_v61 }
  0x32   : > { %v1120_v12 = vrot.slane %v485_v62, 10  ;;  %v610_v13 = vmul.f32 %v1317_v5, %v609_v6  ;;  %v640_v14 = vstv %s1338_s8  ;;  %v613_v20 = vstv %s1345_s11 }
  0x33   : > { %v418_v15 = vmul.f32 0.33333334, %v417_v0  ;;  %v523_v16 = vrot.slane %v492_v1, %v1307_v3  ;;  %v527_v17 = vrot.slane %v492_v1, %v1309_v4  ;;  %v476_v18 = vadd.f32 %v1117_v2, %v462_v31 }
  0x34   : > { %v450_v19 = vsub.f32 %v433_v60, %v449_v11  ;;  %v627_v21 = vstv %s1347_s12  ;;  %v1365_v22 = vmul.f32 %v609_v6, %v1324_v10  ;;  %v614_v31 = vmul.f32 %v1317_v5, %v613_v20 }
  0x35   : > { %v496_v24 = vmul.f32 %v495_v23, %v418_v15  ;;  %v533_v25 = vrot.slane %v523_v16, %v1307_v3  ;;  %v537_v26 = vrot.slane %v527_v17, %v1307_v3  ;;  %v645_v27 = vmul.f32 %v644_v51, %v418_v15 }
  0x36   : > { %v1373_v28 = vmul.f32 0.33333334, %v450_v19  ;;  %v1377_v29 = vmul.f32 %v793_v58, %v418_v15  ;;  %v490_v30 = vadd.f32 %v1120_v12, %v476_v18  ;;  %v1125_v42 = vrot.slane %v614_v31, 9 }
  0x37   : > { %v502_v32 = vrot.slane %v496_v24, %v1307_v3  ;;  %v506_v33 = vrot.slane %v496_v24, %v1309_v4  ;;  %v651_v34 = vrot.slane %v645_v27, %v1307_v3  ;;  %v655_v35 = vrot.slane %v645_v27, %v1309_v4 }
  0x38   : > { %v800_v36 = vrot.slane %v1377_v29, %v1307_v3  ;;  %v804_v37 = vrot.slane %v1377_v29, %v1309_v4  ;;  %v493_v38 = vadd.f32 %v491_v8, %v490_v30  ;;  %v497_v39 = vmul.f32 %v495_v23, %v1373_v28 }
  0x39   : > { %v512_v40 = vrot.slane %v502_v32, %v1307_v3  ;;  %v516_v41 = vrot.slane %v506_v33, %v1307_v3  ;;  %v628_v43 = vmul.f32 %v1317_v5, %v627_v21  ;;  %v619_v48 = vadd.f32 %v1125_v42, %v610_v13 }
  0x3a   : > { %v546_v44 = vrot.slane %v497_v39, %v1307_v3  ;;  %v550_v45 = vrot.slane %v497_v39, %v1309_v4  ;;  %v567_v46 = vrot.slane %v493_v38, %v1307_v3  ;;  %v571_v47 = vrot.slane %v493_v38, %v1309_v4 }
  0x3b   : > { %v517_v8 = vmul.f32 %v512_v40, %v1319_v7  ;;  %v518_v23 = vmul.f32 %v516_v41, %v1319_v7  ;;  %v1128_v49 = vrot.slane %v628_v43, 10  ;;  %v661_v59 = vrot.slane %v651_v34, %v1307_v3 }
  0x3c   : > { %v556_v50 = vrot.slane %v546_v44, %v1307_v3  ;;  %v560_v52 = vrot.slane %v550_v45, %v1307_v3  ;;  %v577_v53 = vrot.slane %v567_v46, %v1307_v3  ;;  %v581_v54 = vrot.slane %v571_v47, %v1307_v3 }
  0x3d   : > { %v538_v55 = vadd.f32 %v533_v25, %v517_v8  ;;  %v539_v56 = vadd.f32 %v537_v26, %v518_v23  ;;  %v633_v57 = vadd.f32 %v1128_v49, %v619_v48  ;;  %v665_v62 = vrot.slane %v655_v35, %v1307_v3 }
  0x3e   : > { %v561_v60 = vmul.f32 %v556_v50, %v1322_v9  ;;  %v562_v61 = vmul.f32 %v560_v52, %v1322_v9  ;;  %v620_v0 = vmul.f32 %v613_v20, %v1324_v10  ;;  %v666_v2 = vmul.f32 %v661_v59, %v1319_v7 }
  0x3f   : > { %1166 = vtanh.f32 %v538_v55  ;;  %v641_v1 = vadd.f32 %v640_v14, %v633_v57  ;;  %v634_v6 = vmul.f32 %v627_v21, %v1324_v10  ;;  %v667_v13 = vmul.f32 %v665_v62, %v1319_v7 }
  0x40   : > { %1168 = vtanh.f32 %v539_v56  ;;  %v582_v11 = vadd.f32 %v577_v53, %v561_v60  ;;  %v583_v12 = vadd.f32 %v581_v54, %v562_v61  ;;  %v1126_v17 = vrot.slane %v620_v0, 9 }
  0x41   : > { %v672_v15 = vrot.slane %v641_v1, %v1307_v3  ;;  %v676_v16 = vrot.slane %v641_v1, %v1309_v4  ;;  %v1129_v18 = vrot.slane %v634_v6, 10  ;;  %v646_v19 = vmul.f32 %v644_v51, %v1373_v28 }
  0x42   : > { %1170 = vtanh.f32 %v582_v11  ;;  %v758_v20 = vstv %s1400_s9  ;;  %v762_v21 = vstv %s1402_s14  ;;  %v625_v26 = vadd.f32 %v1126_v17, %v1365_v22 }
  0x43   : > { %1172 = vtanh.f32 %v583_v12  ;;  %v682_v24 = vrot.slane %v672_v15, %v1307_v3  ;;  %v686_v25 = vrot.slane %v676_v16, %v1307_v3  ;;  %v695_v27 = vrot.slane %v646_v19, %v1307_v3 }
  0x44   : > { %v699_v30 = vrot.slane %v646_v19, %v1309_v4  ;;  %v759_v31 = vmul.f32 %v1317_v5, %v758_v20  ;;  %v763_v32 = vmul.f32 %v1317_v5, %v762_v21  ;;  %v639_v34 = vadd.f32 %v1129_v18, %v625_v26 }
  0x45   : > { %v687_v51 = vadd.f32 %v682_v24, %v666_v2  ;;  %v688_v33 = vadd.f32 %v686_v25, %v667_v13  ;;  %v776_v35 = vstv %s1411_s13  ;;  %v705_v38 = vrot.slane %v695_v27, %v1307_v3 }
  0x46   : > { %v709_v39 = vrot.slane %v699_v30, %v1307_v3  ;;  %v1134_v22 = vrot.slane %v763_v32, 9  ;;  %v777_v40 = vmul.f32 %v1317_v5, %v776_v35  ;;  %v642_v41 = vadd.f32 %v640_v14, %v639_v34 }
  0x47   : > { %1174 = vtanh.f32 %v687_v51  ;;  %v789_v42 = vstv %s1421_s15  ;;  %v810_v43 = vrot.slane %v800_v36, %v1307_v3  ;;  %v710_v44 = vmul.f32 %v705_v38, %v1322_v9 }
  0x48   : > { %1176 = vtanh.f32 %v688_v33  ;;  %v711_v45 = vmul.f32 %v709_v39, %v1322_v9  ;;  %v768_v46 = vadd.f32 %v1134_v22, %v759_v31  ;;  %v716_v8 = vrot.slane %v642_v41, %v1307_v3 }
  0x49   : > { %v1167_v47 = vpop.eup %1166  ;;  %v720_v5 = vrot.slane %v642_v41, %v1309_v4  ;;  %v1137_v23 = vrot.slane %v777_v40, 10  ;;  %v814_v14 = vrot.slane %v804_v37, %v1307_v3  ;;  %v815_v36 = vmul.f32 %v810_v43, %v1319_v7 }
  0x4a   : > { %v1169_v48 = vpop.eup %1168  ;;  %v760_v49 = vmul.f32 %v758_v20, %v1324_v10  ;;  %v769_v50 = vmul.f32 %v762_v21, %v1324_v10  ;;  %v783_v52 = vmul.f32 %v776_v35, %v1324_v10  ;;  %v726_v29 = vrot.slane %v716_v8, %v1307_v3 }
  0x4b   : > { %v594_v53 = vcombine.low %v1167_v47, %v1169_v48  ;;  %v730_v37 = vrot.slane %v720_v5, %v1307_v3  ;;  %v782_v54 = vadd.f32 %v1137_v23, %v768_v46  ;;  %v816_v56 = vmul.f32 %v814_v14, %v1319_v7 }
  0x4c   : > { %v1171_v55 = vpop.eup %1170  ;;  %v1135_v57 = vrot.slane %v769_v50, 9  ;;  %v1138_v59 = vrot.slane %v783_v52, 10  ;;  %v795_v60 = vmul.f32 %v793_v58, %v1373_v28  ;;  %v731_v62 = vadd.f32 %v726_v29, %v710_v44 }
  0x4d   : > { %v1173_v61 = vpop.eup %1172  ;;  %596 = vst [vmem:[%s1464_s18] sm:$0x77] %v594_v53  ;;  %v586_v10 = vsub.f32 %v1171_v55, %v1167_v47  ;;  %v732_v0 = vadd.f32 %v730_v37, %v711_v45  ;;  %v790_v1 = vadd.f32 %v789_v42, %v782_v54 }
  0x4e   : > { %v599_v2 = vcombine.low %v1171_v55, %v1173_v61  ;;  %v587_v6 = vsub.f32 %v1173_v61, %v1169_v48  ;;  %v774_v7 = vadd.f32 %v1135_v57, %v760_v49  ;;  %v844_v11 = vrot.slane %v795_v60, %v1307_v3 }
  0x4f   : > { %v588_v12 = vmul.f32 %v586_v10, %v1353_v63  ;;  %1178 = vtanh.f32 %v731_v62  ;;  %v821_v58 = vrot.slane %v790_v1, %v1307_v3  ;;  %v825_v28 = vrot.slane %v790_v1, %v1309_v4 }
  0x50   : > { %601 = vst [vmem:[%s1481_s21] sm:$0x77] %v599_v2  ;;  %v589_v13 = vmul.f32 %v587_v6, %v1353_v63  ;;  %1180 = vtanh.f32 %v732_v0  ;;  %v788_v15 = vadd.f32 %v1138_v59, %v774_v7  ;;  %v848_v16 = vrot.slane %v795_v60, %v1309_v4 }
  0x51   : > { %v1175_v17 = vpop.eup %1174  ;;  %v590_v18 = vadd.f32 %v1167_v47, %v588_v12  ;;  %v831_v19 = vrot.slane %v821_v58, %v1307_v3  ;;  %v835_v20 = vrot.slane %v825_v28, %v1307_v3  ;;  %v854_v21 = vrot.slane %v844_v11, %v1307_v3 }
  0x52   : > { %v1177_v24 = vpop.eup %1176  ;;  %v591_v25 = vadd.f32 %v1169_v48, %v589_v13  ;;  %v791_v26 = vadd.f32 %v789_v42, %v788_v15  ;;  %v858_v27 = vrot.slane %v848_v16, %v1307_v3 }
  0x53   : > { %v743_v30 = vcombine.low %v1175_v17, %v1177_v24  ;;  %v836_v31 = vadd.f32 %v831_v19, %v815_v36  ;;  %v837_v32 = vadd.f32 %v835_v20, %v816_v56  ;;  %v859_v51 = vmul.f32 %v854_v21, %v1322_v9 }
  0x54   : > { %v604_v33 = vcombine.low %v590_v18, %v591_v25  ;;  %v860_v34 = vmul.f32 %v858_v27, %v1322_v9  ;;  %v865_v35 = vrot.slane %v791_v26, %v1307_v3  ;;  %v869_v38 = vrot.slane %v791_v26, %v1309_v4 }
  0x55   : > { %745 = vst [vmem:[%s1464_s18 + $0x8] sm:$0x77] %v743_v30  ;;  %1182 = vtanh.f32 %v836_v31 }
  0x56   : > { %606 = vst [vmem:[%s1498_s26] sm:$0x77] %v604_v33  ;;  %1184 = vtanh.f32 %v837_v32  ;;  %v875_v39 = vrot.slane %v865_v35, %v1307_v3  ;;  %v879_v22 = vrot.slane %v869_v38, %v1307_v3 }
  0x58   : > { %v880_v40 = vadd.f32 %v875_v39, %v859_v51  ;;  %v881_v41 = vadd.f32 %v879_v22, %v860_v34 }
  0x59   : > { %v1179_v42 = vpop.eup %1178 }
  0x5a   : > { %v1181_v43 = vpop.eup %1180  ;;  %v735_v9 = vsub.f32 %v1179_v42, %v1175_v17  ;;  %1186 = vtanh.f32 %v880_v40 }
  0x5b   : > { %v748_v44 = vcombine.low %v1179_v42, %v1181_v43  ;;  %v736_v45 = vsub.f32 %v1181_v43, %v1177_v24  ;;  %1188 = vtanh.f32 %v881_v41 }
  0x5c   : > { %v737_v4 = vmul.f32 %v735_v9, %v1353_v63 }
  0x5d   : > { %750 = vst [vmem:[%s1481_s21 + $0x8] sm:$0x77] %v748_v44  ;;  %v738_v46 = vmul.f32 %v736_v45, %v1353_v63 }
  0x5e   : > { %v739_v47 = vadd.f32 %v1175_v17, %v737_v4 }
  0x5f   : > { %v1183_v8 = vpop.eup %1182  ;;  %v740_v3 = vadd.f32 %v1177_v24, %v738_v46 }
  0x60   : > { %v1185_v5 = vpop.eup %1184 }
  0x61   : > { %v753_v23 = vcombine.low %v739_v47, %v740_v3  ;;  %v892_v14 = vcombine.low %v1183_v8, %v1185_v5 }
  0x63   : > { %755 = vst [vmem:[%s1498_s26 + $0x8] sm:$0x77] %v753_v23  ;;  %894 = vst [vmem:[%s1464_s18 + $0x10] sm:$0x77] %v892_v14 }
  0x64   : > { %v1187_v48 = vpop.eup %1186 }
  0x65   : > { %v1189_v36 = vpop.eup %1188  ;;  %v884_v49 = vsub.f32 %v1187_v48, %v1183_v8 }
  0x66   : > { %v897_v50 = vcombine.low %v1187_v48, %v1189_v36  ;;  %v885_v52 = vsub.f32 %v1189_v36, %v1185_v5 }
  0x67   : > { %v886_v53 = vmul.f32 %v884_v49, %v1353_v63 }
  0x68   : > { %899 = vst [vmem:[%s1481_s21 + $0x10] sm:$0x77] %v897_v50  ;;  %v887_v29 = vmul.f32 %v885_v52, %v1353_v63 }
  0x69   : > { %v888_v37 = vadd.f32 %v1183_v8, %v886_v53 }
  0x6a   : > { %v889_v54 = vadd.f32 %v1185_v5, %v887_v29 }
  0x6c   : > { %v902_v55 = vcombine.low %v888_v37, %v889_v54 }
  0x6e   : > { %904 = vst [vmem:[%s1498_s26 + $0x10] sm:$0x77] %v902_v55 }
  0x6f PF: > { %s19_s24 = sadd.s32 1, %s1215_s24  }
  0x70   : > { %p16_p1 = scmp.ge.s32.totalorder %s19_s24, 4  }
  0x72   :  { %18 = sbr.rel (!%p16_p1) target bundleno = 1 (0x1), region = 108 }
  0x79   :  { %958 = vsyncpa [#allocation3], 1 }
  0x7a   :  { %960 = vsyncpa [#allocation3 + $0x1], 1 }

</bundles_post_ra>
